<compile_context>
chip_gen: v7x
topology: tpu7x:2x2x1
jax: 0.10.0
libtpu: 0.0.40
codegen_flags: <defaults>
</compile_context>

<pallas_src>
import functools

import jax
import jax.numpy as jnp
from jax.experimental import pallas as pl
from jax.experimental.pallas import tpu as pltpu


def _mlp_kernel(x_ref, w1_ref, b1_ref, w2_ref, b2_ref, w3_ref, b3_ref,
                w4_ref, b4_ref, o_ref):
    # --- fc1 + ReLU on the VPU/XLU (K=8 contraction as broadcast-mul-adds, f32) ---
    x = x_ref[...]                       # (TB, 8)  f32
    w1 = w1_ref[...]                     # (8, 128) f32
    h = x[:, 0:1] * w1[0:1, :]
    for k in range(1, 8):                # static unroll; stays off the MXU push slot
        h = h + x[:, k:k + 1] * w1[k:k + 1, :]
    h = jnp.maximum(h + b1_ref[...], 0.0).astype(jnp.bfloat16)

    # --- fc2 + ReLU (bf16 operands, f32 MXU accumulate) ---
    h = jnp.dot(h, w2_ref[...], preferred_element_type=jnp.float32)
    h = jnp.maximum(h + b2_ref[...], 0.0).astype(jnp.bfloat16)

    # --- fc3 + ReLU ---
    h = jnp.dot(h, w3_ref[...], preferred_element_type=jnp.float32)
    h = jnp.maximum(h + b3_ref[...], 0.0).astype(jnp.bfloat16)

    # --- output layer; 100*sigmoid(z) == 50*tanh(z/2) + 50 (single EUP op) ---
    logits = jnp.dot(h, w4_ref[...], preferred_element_type=jnp.float32)
    logits = logits + b4_ref[...]
    o_ref[...] = 50.0 * jnp.tanh(0.5 * logits) + 50.0


def _round_up(x, m):
    return (x + m - 1) // m * m


@functools.partial(jax.jit, static_argnames=("tb",))
def ann_forward(x, params, *, tb=4096):
    """x: (B, 8) float32.  params: dict of f32 weights (in,out) and biases (1,out)."""
    B, f_in = x.shape
    assert f_in == 8

    # Batch tiling: big tiles amortise the ~0.35 us/step overhead; force >= 2 grid
    # steps (when B allows) so v7x megacore can shard tiles across both TCs, and
    # re-balance the tile so row padding is at most one 8-row group.
    B8 = _round_up(B, 8)
    TB0 = max(8, min(tb, B8))
    steps = pl.cdiv(B8, TB0)
    if steps == 1 and B8 >= 16:
        steps = 2
    TB = _round_up(pl.cdiv(B8, steps), 8)
    B_pad = TB * steps
    if B_pad != B:
        x = jnp.pad(x, ((0, B_pad - B), (0, 0)))

    # fc1 runs on the VPU -> keep w1/b1 f32.  The wide MXU layers use bf16 weights.
    w1 = params["w1"]                                  # (8, 128)   f32
    w2 = params["w2"].astype(jnp.bfloat16)             # (128, 256) bf16
    w3 = params["w3"].astype(jnp.bfloat16)             # (256, 128) bf16
    w4 = params["w4"].astype(jnp.bfloat16)             # (128, 8)   bf16
    b1, b2, b3, b4 = params["b1"], params["b2"], params["b3"], params["b4"]

    grid = (steps,)
    const = lambda i: (0, 0)          # weights/biases: fetched once, VMEM-resident

    per_row_flops = 2 * (8 * 128 + 128 * 256 + 256 * 128 + 128 * 8)
    weight_bytes = (4 * 8 * 128
                    + 2 * (128 * 256 + 256 * 128 + 128 * 8)
                    + 4 * (128 + 256 + 128 + 8))

    out = pl.pallas_call(
        _mlp_kernel,
        out_shape=jax.ShapeDtypeStruct((B_pad, 8), jnp.float32),
        grid_spec=pltpu.PrefetchScalarGridSpec(
            num_scalar_prefetch=0,
            grid=grid,
            in_specs=[
                pl.BlockSpec((TB, 8), lambda i: (i, 0)),   # x tile (pipelined)
                pl.BlockSpec((8, 128), const),             # w1 (f32, VPU layer)
                pl.BlockSpec((1, 128), const),             # b1
                pl.BlockSpec((128, 256), const),           # w2
                pl.BlockSpec((1, 256), const),             # b2
                pl.BlockSpec((256, 128), const),           # w3
                pl.BlockSpec((1, 128), const),             # b3
                pl.BlockSpec((128, 8), const),             # w4 (unpadded)
                pl.BlockSpec((1, 8), const),               # b4
            ],
            out_specs=pl.BlockSpec((TB, 8), lambda i: (i, 0)),
        ),
        compiler_params=pltpu.CompilerParams(
            dimension_semantics=("parallel",),      # shard batch tiles across TCs (v7x)
            vmem_limit_bytes=48 * 1024 * 1024,      # headroom for TB up to 4096
        ),
        cost_estimate=pl.CostEstimate(
            flops=B_pad * per_row_flops,
            transcendentals=B_pad * 8,              # one tanh per output element
            bytes_accessed=B_pad * 8 * 4 * 2 + weight_bytes,
        ),
    )(x, w1, b1, w2, b2, w3, b3, w4, b4)

    return out[:B]


def init_params(key):
    """Deterministic init mimicking nn.Linear default U(-1/sqrt(fan_in), +1/sqrt(fan_in))."""
    dims = [(8, 128), (128, 256), (256, 128), (128, 8)]
    names = ["1", "2", "3", "4"]
    params = {}
    keys = jax.random.split(key, 2 * len(dims))
    for i, ((fan_in, fan_out), n) in enumerate(zip(dims, names)):
        bound = 1.0 / jnp.sqrt(jnp.float32(fan_in))
        w = jax.random.uniform(keys[2 * i], (fan_in, fan_out),
                               minval=-bound, maxval=bound, dtype=jnp.float32)
        b = jax.random.uniform(keys[2 * i + 1], (1, fan_out),
                               minval=-bound, maxval=bound, dtype=jnp.float32)
        params["w" + n] = w
        params["b" + n] = b
    return params


def ann_reference(x, params):
    """Reference mirroring the kernel's math: f32 fc1, bf16-operand fc2-4, exact sigmoid."""
    def bdot(a, w):
        return jnp.dot(a.astype(jnp.bfloat16), w.astype(jnp.bfloat16),
                       preferred_element_type=jnp.float32)
    h = jnp.maximum(jnp.dot(x, params["w1"]) + params["b1"], 0.0)
    h = jnp.maximum(bdot(h, params["w2"]) + params["b2"], 0.0)
    h = jnp.maximum(bdot(h, params["w3"]) + params["b3"], 0.0)
    return 100.0 * jax.nn.sigmoid(bdot(h, params["w4"]) + params["b4"])


if __name__ == "__main__":
    key = jax.random.PRNGKey(0)
    k_params, k_x = jax.random.split(key)
    params = init_params(k_params)

    B = 64  # small test batch; production callers should use large B (tb=4096 tiles)
    x = jax.random.normal(k_x, (B, 8), dtype=jnp.float32)

    out = ann_forward(x, params)
    out = jax.block_until_ready(out)

    ref = ann_reference(x, params)
    assert out.shape == (B, 8)
    # bf16 matmul operands in the kernel vs. f32-ish reference: allow modest tolerance
    # on outputs in [0, 100].
    assert jnp.allclose(out, ref, atol=0.5, rtol=5e-2), (
        float(jnp.max(jnp.abs(out - ref))))
    print("KERNEL_OK")
</pallas_src>

<mosaic_0001>
module attributes {stable_mosaic.version = 11 : i64} {
  func.func @_mlp_kernel(%arg0: i32, %arg1: memref<32x8xf32, #tpu.memory_space<vmem>>, %arg2: memref<8x128xf32, #tpu.memory_space<vmem>>, %arg3: memref<1x128xf32, #tpu.memory_space<vmem>>, %arg4: memref<128x256xbf16, #tpu.memory_space<vmem>>, %arg5: memref<1x256xf32, #tpu.memory_space<vmem>>, %arg6: memref<256x128xbf16, #tpu.memory_space<vmem>>, %arg7: memref<1x128xf32, #tpu.memory_space<vmem>>, %arg8: memref<128x8xbf16, #tpu.memory_space<vmem>>, %arg9: memref<1x8xf32, #tpu.memory_space<vmem>>, %arg10: memref<32x8xf32, #tpu.memory_space<vmem>>) attributes {dimension_semantics = [#tpu.dimension_semantics<parallel>], iteration_bounds = array<i64: 2>, scalar_prefetch = 0 : i64, scratch_operands = 0 : i64, tpu.core_type = #tpu.core_type<tc>, window_params = [{transform_indices = @transform_0, window_bounds = array<i64: 32, 8>}, {pipeline_mode = #tpu.pipeline_mode<synchronous>, transform_indices = @transform_1, window_bounds = array<i64: 8, 128>}, {pipeline_mode = #tpu.pipeline_mode<synchronous>, transform_indices = @transform_2, window_bounds = array<i64: 1, 128>}, {pipeline_mode = #tpu.pipeline_mode<synchronous>, transform_indices = @transform_3, window_bounds = array<i64: 128, 256>}, {pipeline_mode = #tpu.pipeline_mode<synchronous>, transform_indices = @transform_4, window_bounds = array<i64: 1, 256>}, {pipeline_mode = #tpu.pipeline_mode<synchronous>, transform_indices = @transform_5, window_bounds = array<i64: 256, 128>}, {pipeline_mode = #tpu.pipeline_mode<synchronous>, transform_indices = @transform_6, window_bounds = array<i64: 1, 128>}, {pipeline_mode = #tpu.pipeline_mode<synchronous>, transform_indices = @transform_7, window_bounds = array<i64: 128, 8>}, {pipeline_mode = #tpu.pipeline_mode<synchronous>, transform_indices = @transform_8, window_bounds = array<i64: 1, 8>}, {transform_indices = @transform_9, window_bounds = array<i64: 32, 8>}]} {
    %c0 = arith.constant 0 : index
    %c0_0 = arith.constant 0 : index
    %0 = vector.load %arg1[%c0, %c0_0] : memref<32x8xf32, #tpu.memory_space<vmem>>, vector<32x8xf32>
    %c0_1 = arith.constant 0 : index
    %c0_2 = arith.constant 0 : index
    %1 = vector.load %arg2[%c0_1, %c0_2] : memref<8x128xf32, #tpu.memory_space<vmem>>, vector<8x128xf32>
    %2 = vector.extract_strided_slice %0 {offsets = [0, 0], sizes = [32, 1], strides = [1, 1]} : vector<32x8xf32> to vector<32x1xf32>
    %3 = vector.extract_strided_slice %1 {offsets = [0, 0], sizes = [1, 128], strides = [1, 1]} : vector<8x128xf32> to vector<1x128xf32>
    %4 = vector.broadcast %2 : vector<32x1xf32> to vector<32x128xf32>
    %5 = vector.broadcast %3 : vector<1x128xf32> to vector<32x128xf32>
    %6 = arith.mulf %4, %5 : vector<32x128xf32>
    %7 = vector.extract_strided_slice %0 {offsets = [0, 1], sizes = [32, 1], strides = [1, 1]} : vector<32x8xf32> to vector<32x1xf32>
    %8 = vector.extract_strided_slice %1 {offsets = [1, 0], sizes = [1, 128], strides = [1, 1]} : vector<8x128xf32> to vector<1x128xf32>
    %9 = vector.broadcast %7 : vector<32x1xf32> to vector<32x128xf32>
    %10 = vector.broadcast %8 : vector<1x128xf32> to vector<32x128xf32>
    %11 = arith.mulf %9, %10 : vector<32x128xf32>
    %12 = arith.addf %6, %11 : vector<32x128xf32>
    %13 = vector.extract_strided_slice %0 {offsets = [0, 2], sizes = [32, 1], strides = [1, 1]} : vector<32x8xf32> to vector<32x1xf32>
    %14 = vector.extract_strided_slice %1 {offsets = [2, 0], sizes = [1, 128], strides = [1, 1]} : vector<8x128xf32> to vector<1x128xf32>
    %15 = vector.broadcast %13 : vector<32x1xf32> to vector<32x128xf32>
    %16 = vector.broadcast %14 : vector<1x128xf32> to vector<32x128xf32>
    %17 = arith.mulf %15, %16 : vector<32x128xf32>
    %18 = arith.addf %12, %17 : vector<32x128xf32>
    %19 = vector.extract_strided_slice %0 {offsets = [0, 3], sizes = [32, 1], strides = [1, 1]} : vector<32x8xf32> to vector<32x1xf32>
    %20 = vector.extract_strided_slice %1 {offsets = [3, 0], sizes = [1, 128], strides = [1, 1]} : vector<8x128xf32> to vector<1x128xf32>
    %21 = vector.broadcast %19 : vector<32x1xf32> to vector<32x128xf32>
    %22 = vector.broadcast %20 : vector<1x128xf32> to vector<32x128xf32>
    %23 = arith.mulf %21, %22 : vector<32x128xf32>
    %24 = arith.addf %18, %23 : vector<32x128xf32>
    %25 = vector.extract_strided_slice %0 {offsets = [0, 4], sizes = [32, 1], strides = [1, 1]} : vector<32x8xf32> to vector<32x1xf32>
    %26 = vector.extract_strided_slice %1 {offsets = [4, 0], sizes = [1, 128], strides = [1, 1]} : vector<8x128xf32> to vector<1x128xf32>
    %27 = vector.broadcast %25 : vector<32x1xf32> to vector<32x128xf32>
    %28 = vector.broadcast %26 : vector<1x128xf32> to vector<32x128xf32>
    %29 = arith.mulf %27, %28 : vector<32x128xf32>
    %30 = arith.addf %24, %29 : vector<32x128xf32>
    %31 = vector.extract_strided_slice %0 {offsets = [0, 5], sizes = [32, 1], strides = [1, 1]} : vector<32x8xf32> to vector<32x1xf32>
    %32 = vector.extract_strided_slice %1 {offsets = [5, 0], sizes = [1, 128], strides = [1, 1]} : vector<8x128xf32> to vector<1x128xf32>
    %33 = vector.broadcast %31 : vector<32x1xf32> to vector<32x128xf32>
    %34 = vector.broadcast %32 : vector<1x128xf32> to vector<32x128xf32>
    %35 = arith.mulf %33, %34 : vector<32x128xf32>
    %36 = arith.addf %30, %35 : vector<32x128xf32>
    %37 = vector.extract_strided_slice %0 {offsets = [0, 6], sizes = [32, 1], strides = [1, 1]} : vector<32x8xf32> to vector<32x1xf32>
    %38 = vector.extract_strided_slice %1 {offsets = [6, 0], sizes = [1, 128], strides = [1, 1]} : vector<8x128xf32> to vector<1x128xf32>
    %39 = vector.broadcast %37 : vector<32x1xf32> to vector<32x128xf32>
    %40 = vector.broadcast %38 : vector<1x128xf32> to vector<32x128xf32>
    %41 = arith.mulf %39, %40 : vector<32x128xf32>
    %42 = arith.addf %36, %41 : vector<32x128xf32>
    %43 = vector.extract_strided_slice %0 {offsets = [0, 7], sizes = [32, 1], strides = [1, 1]} : vector<32x8xf32> to vector<32x1xf32>
    %44 = vector.extract_strided_slice %1 {offsets = [7, 0], sizes = [1, 128], strides = [1, 1]} : vector<8x128xf32> to vector<1x128xf32>
    %45 = vector.broadcast %43 : vector<32x1xf32> to vector<32x128xf32>
    %46 = vector.broadcast %44 : vector<1x128xf32> to vector<32x128xf32>
    %47 = arith.mulf %45, %46 : vector<32x128xf32>
    %48 = arith.addf %42, %47 : vector<32x128xf32>
    %c0_3 = arith.constant 0 : index
    %c0_4 = arith.constant 0 : index
    %49 = vector.load %arg3[%c0_3, %c0_4] : memref<1x128xf32, #tpu.memory_space<vmem>>, vector<1x128xf32>
    %50 = vector.broadcast %49 : vector<1x128xf32> to vector<32x128xf32>
    %51 = arith.addf %48, %50 : vector<32x128xf32>
    %cst = arith.constant 0.000000e+00 : f32
    %52 = vector.broadcast %cst : f32 to vector<32x128xf32>
    %53 = arith.maximumf %51, %52 : vector<32x128xf32>
    %54 = arith.truncf %53 : vector<32x128xf32> to vector<32x128xbf16>
    %c0_5 = arith.constant 0 : index
    %c0_6 = arith.constant 0 : index
    %55 = vector.load %arg4[%c0_5, %c0_6] : memref<128x256xbf16, #tpu.memory_space<vmem>>, vector<128x256xbf16>
    %cst_7 = arith.constant dense<0.000000e+00> : vector<32x256xf32>
    %56 = tpu.matmul %54, %55, %cst_7 {dimension_numbers = #tpu.dot_dimension_numbers<[1], [0], [0], [1], [0, 0, 1, 1], [], []>} : vector<32x128xbf16>, vector<128x256xbf16>, vector<32x256xf32> -> vector<32x256xf32>
    %c0_8 = arith.constant 0 : index
    %c0_9 = arith.constant 0 : index
    %57 = vector.load %arg5[%c0_8, %c0_9] : memref<1x256xf32, #tpu.memory_space<vmem>>, vector<1x256xf32>
    %58 = vector.broadcast %57 : vector<1x256xf32> to vector<32x256xf32>
    %59 = arith.addf %56, %58 : vector<32x256xf32>
    %cst_10 = arith.constant 0.000000e+00 : f32
    %60 = vector.broadcast %cst_10 : f32 to vector<32x256xf32>
    %61 = arith.maximumf %59, %60 : vector<32x256xf32>
    %62 = arith.truncf %61 : vector<32x256xf32> to vector<32x256xbf16>
    %c0_11 = arith.constant 0 : index
    %c0_12 = arith.constant 0 : index
    %63 = vector.load %arg6[%c0_11, %c0_12] : memref<256x128xbf16, #tpu.memory_space<vmem>>, vector<256x128xbf16>
    %cst_13 = arith.constant dense<0.000000e+00> : vector<32x128xf32>
    %64 = tpu.matmul %62, %63, %cst_13 {dimension_numbers = #tpu.dot_dimension_numbers<[1], [0], [0], [1], [0, 0, 1, 1], [], []>} : vector<32x256xbf16>, vector<256x128xbf16>, vector<32x128xf32> -> vector<32x128xf32>
    %c0_14 = arith.constant 0 : index
    %c0_15 = arith.constant 0 : index
    %65 = vector.load %arg7[%c0_14, %c0_15] : memref<1x128xf32, #tpu.memory_space<vmem>>, vector<1x128xf32>
    %66 = vector.broadcast %65 : vector<1x128xf32> to vector<32x128xf32>
    %67 = arith.addf %64, %66 : vector<32x128xf32>
    %cst_16 = arith.constant 0.000000e+00 : f32
    %68 = vector.broadcast %cst_16 : f32 to vector<32x128xf32>
    %69 = arith.maximumf %67, %68 : vector<32x128xf32>
    %70 = arith.truncf %69 : vector<32x128xf32> to vector<32x128xbf16>
    %c0_17 = arith.constant 0 : index
    %c0_18 = arith.constant 0 : index
    %71 = vector.load %arg8[%c0_17, %c0_18] : memref<128x8xbf16, #tpu.memory_space<vmem>>, vector<128x8xbf16>
    %cst_19 = arith.constant dense<0.000000e+00> : vector<32x8xf32>
    %72 = tpu.matmul %70, %71, %cst_19 {dimension_numbers = #tpu.dot_dimension_numbers<[1], [0], [0], [1], [0, 0, 1, 1], [], []>} : vector<32x128xbf16>, vector<128x8xbf16>, vector<32x8xf32> -> vector<32x8xf32>
    %c0_20 = arith.constant 0 : index
    %c0_21 = arith.constant 0 : index
    %73 = vector.load %arg9[%c0_20, %c0_21] : memref<1x8xf32, #tpu.memory_space<vmem>>, vector<1x8xf32>
    %74 = vector.broadcast %73 : vector<1x8xf32> to vector<32x8xf32>
    %75 = arith.addf %72, %74 : vector<32x8xf32>
    %cst_22 = arith.constant 5.000000e-01 : f32
    %76 = vector.broadcast %cst_22 : f32 to vector<32x8xf32>
    %77 = arith.mulf %76, %75 : vector<32x8xf32>
    %78 = math.tanh %77 : vector<32x8xf32>
    %cst_23 = arith.constant 5.000000e+01 : f32
    %79 = vector.broadcast %cst_23 : f32 to vector<32x8xf32>
    %80 = arith.mulf %79, %78 : vector<32x8xf32>
    %cst_24 = arith.constant 5.000000e+01 : f32
    %81 = vector.broadcast %cst_24 : f32 to vector<32x8xf32>
    %82 = arith.addf %80, %81 : vector<32x8xf32>
    %c0_25 = arith.constant 0 : index
    %c0_26 = arith.constant 0 : index
    %83 = vector.load %arg10[%c0_25, %c0_26] : memref<32x8xf32, #tpu.memory_space<vmem>>, vector<32x8xf32>
    tpu.vector_store %arg10[%c0_25, %c0_26], %82 {strides = array<i32>} : memref<32x8xf32, #tpu.memory_space<vmem>>, vector<32x8xf32>,
    return
  }
  func.func @transform_0(%arg0: i32) -> (i32, i32) {
    %c0_i32 = arith.constant 0 : i32
    %c0_i32_0 = arith.constant 0 : i32
    return %arg0, %c0_i32 : i32, i32
  }
  func.func @transform_1(%arg0: i32) -> (i32, i32) {
    %c0_i32 = arith.constant 0 : i32
    %c0_i32_0 = arith.constant 0 : i32
    %c0_i32_1 = arith.constant 0 : i32
    return %c0_i32, %c0_i32_0 : i32, i32
  }
  func.func @transform_2(%arg0: i32) -> (i32, i32) {
    %c0_i32 = arith.constant 0 : i32
    %c0_i32_0 = arith.constant 0 : i32
    %c0_i32_1 = arith.constant 0 : i32
    return %c0_i32, %c0_i32_0 : i32, i32
  }
  func.func @transform_3(%arg0: i32) -> (i32, i32) {
    %c0_i32 = arith.constant 0 : i32
    %c0_i32_0 = arith.constant 0 : i32
    %c0_i32_1 = arith.constant 0 : i32
    return %c0_i32, %c0_i32_0 : i32, i32
  }
  func.func @transform_4(%arg0: i32) -> (i32, i32) {
    %c0_i32 = arith.constant 0 : i32
    %c0_i32_0 = arith.constant 0 : i32
    %c0_i32_1 = arith.constant 0 : i32
    return %c0_i32, %c0_i32_0 : i32, i32
  }
  func.func @transform_5(%arg0: i32) -> (i32, i32) {
    %c0_i32 = arith.constant 0 : i32
    %c0_i32_0 = arith.constant 0 : i32
    %c0_i32_1 = arith.constant 0 : i32
    return %c0_i32, %c0_i32_0 : i32, i32
  }
  func.func @transform_6(%arg0: i32) -> (i32, i32) {
    %c0_i32 = arith.constant 0 : i32
    %c0_i32_0 = arith.constant 0 : i32
    %c0_i32_1 = arith.constant 0 : i32
    return %c0_i32, %c0_i32_0 : i32, i32
  }
  func.func @transform_7(%arg0: i32) -> (i32, i32) {
    %c0_i32 = arith.constant 0 : i32
    %c0_i32_0 = arith.constant 0 : i32
    %c0_i32_1 = arith.constant 0 : i32
    return %c0_i32, %c0_i32_0 : i32, i32
  }
  func.func @transform_8(%arg0: i32) -> (i32, i32) {
    %c0_i32 = arith.constant 0 : i32
    %c0_i32_0 = arith.constant 0 : i32
    %c0_i32_1 = arith.constant 0 : i32
    return %c0_i32, %c0_i32_0 : i32, i32
  }
  func.func @transform_9(%arg0: i32) -> (i32, i32) {
    %c0_i32 = arith.constant 0 : i32
    %c0_i32_0 = arith.constant 0 : i32
    return %arg0, %c0_i32 : i32, i32
  }
}

</mosaic_0001>

<bundles_post_ra>
// kernel: ann_forward.1
= control target key start
LH: loop header
LB: loop body
LE: loop exit
PB: predicated region body
PF: predicated region fallthrough
CT: control target
= control target key end

     0   :  { %s1417_s30 = smov 0   ;;  %s1663_s0 = inlined_call_operand.vmem [shape: f32[64,8], index: 0, kind: input, shape index: {}]   ;;  %s1664_s1 = inlined_call_operand.vmem [shape: f32[8,128], index: 1, kind: input, shape index: {}]   ;;  %s1665_s2 = inlined_call_operand.vmem [shape: f32[1,128], index: 2, kind: input, shape index: {}]   ;;  %s1666_s3 = inlined_call_operand.vmem [shape: bf16[128,256], index: 3, kind: input, shape index: {}]   ;;  %s1667_s4 = inlined_call_operand.vmem [shape: f32[1,256], index: 4, kind: input, shape index: {}]   ;;  %s1668_s5 = inlined_call_operand.vmem [shape: bf16[256,128], index: 5, kind: input, shape index: {}]   ;;  %s1669_s6 = inlined_call_operand.vmem [shape: f32[1,128], index: 6, kind: input, shape index: {}]   ;;  %s1670_s7 = inlined_call_operand.vmem [shape: bf16[128,8], index: 7, kind: input, shape index: {}]   ;;  %s1671_s8 = inlined_call_operand.vmem [shape: f32[1,8], index: 8, kind: input, shape index: {}]   ;;  %s1672_s9 = inlined_call_operand.vmem [shape: f32[64,8], index: 9, kind: output, shape index: {}]  }
   0x1 LB: > { %s1143_s10 = sadd.s32 4294967295, %s1357_s30   ;;  %p1147_p0 = scmp.ge.s32.totalorder %s1357_s30, 1  ;;  %s1357_s30 = sphi %s1417_s30, %s19_s30  }
   0x2   : > { %p288_p1 = scmp.lt.s32.totalorder %s1357_s30, 3 }
   0x4   : > { %p289_p2 = pnand %p1147_p0, %p288_p1 }
   0x5   : > { %s1148_s11 = sshll.u32 (!%p289_p2), %s1143_s10, 2  ;;  %v1359_v0 = vmov (!%p289_p2), 1   ;;  %v1360_v1 = vmov (!%p289_p2), 0   ;;  %v1361_v4 = vmov (!%p289_p2), 3   ;;  %v1362_v5 = vmov (!%p289_p2), 2   ;;  %v1319_v28 = vld [vmem:[%s1668_s5 + $0x40] sm:$0xff] (!%p289_p2)  }
   0x6   : > { %292 = sbr.rel (%p289_p2) target bundleno = 925 (0x39d), region = 56  ;;  %1272 = vset.pattern.permute.xlu1 (!%p289_p2), %v1359_v0  ;;  %1271 = vset.pattern.permute.xlu0 (!%p289_p2), %v1360_v1  ;;  %p325_p3 = scmp.lt.s32.totalorder (!%p289_p2), %s1148_s11, 7  ;;  %v1363_v8 = vmov (!%p289_p2), 4   ;;  %v1364_v9 = vmov (!%p289_p2), 7   ;;  %v1365_v10 = vmov (!%p289_p2), 5   ;;  %v1366_v11 = vmov (!%p289_p2), 6  }
   0x7   : > { %723 = vmatprep.mubr.bf16.mxu0 (!%p289_p2), %v1360_v1  ;;  %v1295_v12 = vld [vmem:[%s1666_s3 + $0x4] ss:$8 sps:$4 sm:$0xff] (!%p289_p2)   ;;  %v1297_v13 = vld [vmem:[%s1666_s3] ss:$8 sps:$4 sm:$0xff] (!%p289_p2)   ;;  %v1298_v14 = vld [vmem:[%s1666_s3 + $0x14] ss:$8 sps:$4 sm:$0xff] (!%p289_p2)   ;;  %1197 = vmatprep.subr.bf16.mxu1 (!%p289_p2), %v1319_v28  ;;  %v362_v49 = vlaneseq (!%p289_p2) }
   0x8   : > { %691 = vmatprep.subr.bf16.mxu0 (!%p289_p2), %v1295_v12  ;;  %v1300_v15 = vld [vmem:[%s1666_s3 + $0x10] ss:$8 sps:$4 sm:$0xff] (!%p289_p2)   ;;  %v1301_v16 = vld [vmem:[%s1666_s3 + $0x24] ss:$8 sps:$4 sm:$0xff] (!%p289_p2)   ;;  %v1303_v17 = vld [vmem:[%s1666_s3 + $0x20] ss:$8 sps:$4 sm:$0xff] (!%p289_p2)  }
   0x9   : > { %692 = vmatpush1.bf16.msra.mxu0 (!%p289_p2), %v1297_v13  ;;  %v1304_v18 = vld [vmem:[%s1666_s3 + $0x34] ss:$8 sps:$4 sm:$0xff] (!%p289_p2)   ;;  %v1306_v19 = vld [vmem:[%s1666_s3 + $0x30] ss:$8 sps:$4 sm:$0xff] (!%p289_p2)   ;;  %v1307_v20 = vld [vmem:[%s1666_s3 + $0x44] ss:$8 sps:$4 sm:$0xff] (!%p289_p2)  }
   0xa   : > { %693 = vmatprep.subr.bf16.mxu0 (!%p289_p2), %v1298_v14  ;;  %v1309_v21 = vld [vmem:[%s1666_s3 + $0x40] ss:$8 sps:$4 sm:$0xff] (!%p289_p2)   ;;  %v1310_v22 = vld [vmem:[%s1666_s3 + $0x54] ss:$8 sps:$4 sm:$0xff] (!%p289_p2)   ;;  %v1312_v23 = vld [vmem:[%s1666_s3 + $0x50] ss:$8 sps:$4 sm:$0xff] (!%p289_p2)  }
   0xb   : > { %v1313_v24 = vld [vmem:[%s1666_s3 + $0x64] ss:$8 sps:$4 sm:$0xff] (!%p289_p2)   ;;  %v1315_v25 = vld [vmem:[%s1666_s3 + $0x60] ss:$8 sps:$4 sm:$0xff] (!%p289_p2)   ;;  %v1316_v26 = vld [vmem:[%s1666_s3 + $0x74] ss:$8 sps:$4 sm:$0xff] (!%p289_p2)  }
   0xc   : > { %v1318_v27 = vld [vmem:[%s1666_s3 + $0x70] ss:$8 sps:$4 sm:$0xff] (!%p289_p2)   ;;  %v1320_v29 = vld [vmem:[%s1668_s5] sm:$0xff] (!%p289_p2)   ;;  %v1321_v30 = vld [vmem:[%s1668_s5 + $0x48] sm:$0xff] (!%p289_p2)   ;;  %v1559_v51 = vshrl.u32 (!%p289_p2), %v362_v49, 7  ;;  %vm1082_vm0 = vcmask (!%p289_p2), 64512  }
   0xd   : > { %s1674_s11 = smov (!%p325_p3, %s1148_s11), 7  ;;  %694 = vmatpush1.bf16.msra.mxu0 %v1300_v15  ;;  %1198 = vmatpush3.bf16.msra.mxu1 %v1320_v29  ;;  %v1322_v31 = vld [vmem:[%s1668_s5 + $0x8] sm:$0xff]   ;;  %v1323_v32 = vld [vmem:[%s1668_s5 + $0x50] sm:$0xff]   ;;  %v1325_v34 = vld [vmem:[%s1668_s5 + $0x58] sm:$0xff]  }
   0xe   : > { %s1149_s12 = sshll.u32 %s1674_s11, 3  ;;  %695 = vmatprep.subr.bf16.mxu0 %v1301_v16  ;;  %1199 = vmatprep.subr.bf16.mxu1 %v1321_v30  ;;  %v1324_v33 = vld [vmem:[%s1668_s5 + $0x10] sm:$0xff]   ;;  %v1326_v35 = vld [vmem:[%s1668_s5 + $0x18] sm:$0xff]   ;;  %v1327_v36 = vld [vmem:[%s1668_s5 + $0x60] sm:$0xff]   ;;  %v388_v54 = vsub.s32 1, %v1559_v51  ;;  %v364_v55 = vsub.s32 0, %v1559_v51 }
   0xf   : > { %s328_s15 = scalar_lea.vmem %s1663_s0, %s1149_s12  ;;  %v1328_v37 = vld [vmem:[%s1668_s5 + $0x20] sm:$0xff]   ;;  %v1329_v38 = vld [vmem:[%s1668_s5 + $0x68] sm:$0xff]   ;;  %v416_v61 = vsub.s32 2, %v1559_v51  ;;  %v444_v62 = vsub.s32 3, %v1559_v51  ;;  %v528_v15 = vsub.s32 6, %v1559_v51  ;;  %s334_s18 = scalar_lea.vmem %s1672_s9, %s1149_s12 }
  0x10   : > { %v337_v2 = vld [vmem:[%s328_s15] sm:$0xff]  ;;  %v1435_v3 = vld [vmem:[%s328_s15 + $0x8] sm:$0xff]  ;;  %v1441_v6 = vld [vmem:[%s328_s15 + $0x10] sm:$0xff] }
  0x11   : > { %371 = vperm.xlu1 %1272, %v337_v2   ;;  %344 = vperm.xlu0 %1271, %v337_v2   ;;  %v1445_v7 = vld [vmem:[%s328_s15 + $0x18] sm:$0xff]  ;;  %v341_v56 = vld [vmem:[%s1664_s1] sm:$0xff] }
  0x12   : > { %696 = vmatpush1.bf16.msra.mxu0 %v1303_v17  ;;  %1200 = vmatpush3.bf16.msra.mxu1 %v1322_v31  ;;  %v389_v59 = vrot.slane %v341_v56, %v388_v54  ;;  %v365_v60 = vrot.slane %v341_v56, %v364_v55 }
  0x13   : > { %697 = vmatprep.subr.bf16.mxu0 %v1304_v18  ;;  %1201 = vmatprep.subr.bf16.mxu1 %v1323_v32 }
  0x15   : > { %375 = vperm.xlu1 %1272, %v1435_v3   ;;  %1275 = vset.pattern.permute.xlu0 %v1361_v4 }
  0x16   : > { %431 = vperm.xlu0 %1275, %v1435_v3   ;;  %698 = vmatpush1.bf16.msra.mxu0 %v1306_v19 }
  0x17   : > { %699 = vmatprep.subr.bf16.mxu0 %v1307_v20  ;;  %1202 = vmatpush3.bf16.msra.mxu1 %v1324_v33 }
  0x18   : > { %1203 = vmatprep.subr.bf16.mxu1 %v1325_v34 }
  0x19   : > { %1273 = vset.pattern.permute.xlu1 %v1362_v5 }
  0x1a   : > { %403 = vperm.xlu1 %1273, %v1435_v3   ;;  %1276 = vset.pattern.permute.xlu0 %v1360_v1 }
  0x1b   : > { %349 = vperm.xlu0 %1276, %v1435_v3   ;;  %700 = vmatpush1.bf16.msra.mxu0 %v1309_v21 }
  0x1c   : > { %701 = vmatprep.subr.bf16.mxu0 %v1310_v22  ;;  %1204 = vmatpush3.bf16.msra.mxu1 %v1326_v35 }
  0x1d   : > { %1205 = vmatprep.subr.bf16.mxu1 %v1327_v36 }
  0x1e   : > { %1274 = vset.pattern.permute.xlu1 %v1361_v4 }
  0x1f   : > { %427 = vperm.xlu1 %1274, %v337_v2   ;;  %354 = vperm.xlu0 %1276, %v1441_v6  }
  0x20   : > { %702 = vmatpush1.bf16.msra.mxu0 %v1312_v23  ;;  %1206 = vmatpush3.bf16.msra.mxu1 %v1328_v37  ;;  %v556_v23 = vsub.s32 7, %v1559_v51 }
  0x21   : > { %703 = vmatprep.subr.bf16.mxu0 %v1313_v24  ;;  %1207 = vmatprep.subr.bf16.mxu1 %v1329_v38 }
  0x22   : > { %v557_v31 = vrot.slane %v341_v56, %v556_v23 }
  0x23   : > { %1277 = vset.pattern.permute.xlu1 %v1363_v8  ;;  %1280 = vset.pattern.permute.xlu0 %v1359_v0 }
  0x24   : > { %455 = vperm.xlu1 %1277, %v337_v2   ;;  %383 = vperm.xlu0 %1280, %v1445_v7  }
  0x25   : > { %704 = vmatpush1.bf16.msra.mxu0 %v1315_v25  ;;  %v1585_v25 = vrot.slane %v341_v56, %v528_v15 }
  0x26   : > { %705 = vmatprep.subr.bf16.mxu0 %v1316_v26 }
  0x28   : > { %459 = vperm.xlu1 %1277, %v1435_v3   ;;  %1281 = vset.pattern.permute.xlu0 %v1362_v5 }
  0x29   : > { %399 = vperm.xlu0 %1281, %v337_v2   ;;  %706 = vmatpush1.bf16.msra.mxu0 %v1318_v27 }
  0x2c   : > { %1278 = vset.pattern.permute.xlu1 %v1360_v1 }
  0x2d   : > { %359 = vperm.xlu1 %1278, %v1445_v7   ;;  %407 = vperm.xlu0 %1281, %v1441_v6  }
  0x31   : > { %1279 = vset.pattern.permute.xlu1 %v1359_v0  ;;  %1286 = vset.pattern.permute.xlu0 %v1364_v9 }
  0x32   : > { %379 = vperm.xlu1 %1279, %v1441_v6   ;;  %539 = vperm.xlu0 %1286, %v337_v2  }
  0x36   : > { %1282 = vset.pattern.permute.xlu1 %v1365_v10  ;;  %1289 = vset.pattern.permute.xlu0 %v1363_v8 }
  0x37   : > { %483 = vperm.xlu1 %1282, %v337_v2   ;;  %467 = vperm.xlu0 %1289, %v1445_v7  }
  0x3b   : > { %487 = vperm.xlu1 %1282, %v1435_v3   ;;  %1290 = vset.pattern.permute.xlu0 %v1366_v11 }
  0x3c   : > { %515 = vperm.xlu0 %1290, %v1435_v3  }
  0x3f   : > { %1283 = vset.pattern.permute.xlu1 %v1362_v5 }
  0x40   : > { %411 = vperm.xlu1 %1283, %v1445_v7   ;;  %519 = vperm.xlu0 %1290, %v1441_v6  }
  0x44   : > { %1284 = vset.pattern.permute.xlu1 %v1366_v11  ;;  %1294 = vset.pattern.permute.xlu0 %v1364_v9 }
  0x45   : > { %511 = vperm.xlu1 %1284, %v337_v2   ;;  %551 = vperm.xlu0 %1294, %v1445_v7  }
  0x49   : > { %1285 = vset.pattern.permute.xlu1 %v1361_v4  ;;  %v417_v4 = vrot.slane %v341_v56, %v416_v61 }
  0x4a   : > { %435 = vperm.xlu1 %1285, %v1441_v6  }
  0x4e   : > { %439 = vperm.xlu1 %1285, %v1445_v7  }
  0x52   : > { %1287 = vset.pattern.permute.xlu1 %v1364_v9 }
  0x53   : > { %543 = vperm.xlu1 %1287, %v1435_v3  }
  0x57   : > { %1288 = vset.pattern.permute.xlu1 %v1363_v8 }
  0x58   : > { %463 = vperm.xlu1 %1288, %v1441_v6  }
  0x5c   : > { %1291 = vset.pattern.permute.xlu1 %v1365_v10  ;;  %v500_v10 = vsub.s32 5, %v1559_v51 }
  0x5d   : > { %491 = vperm.xlu1 %1291, %v1441_v6  }
  0x5e   : > { %v501_v19 = vrot.slane %v341_v56, %v500_v10 }
  0x61   : > { %495 = vperm.xlu1 %1291, %v1445_v7  }
  0x65   : > { %1292 = vset.pattern.permute.xlu1 %v1366_v11 }
  0x66   : > { %523 = vperm.xlu1 %1292, %v1445_v7  }
  0x6a   : > { %1293 = vset.pattern.permute.xlu1 %v1364_v9  ;;  %v472_v9 = vsub.s32 4, %v1559_v51 }
  0x6b   : > { %547 = vperm.xlu1 %1293, %v1441_v6   ;;  %v1578_v6 = vrot.slane %v341_v56, %v444_v62 }
  0x6c   : > { %v473_v18 = vrot.slane %v341_v56, %v472_v9 }
  0x90   : > { %v372_v39 = vpop.permute.xlu1 %371  ;;  %v345_v42 = vpop.permute.xlu0 %344 }
  0x91   : > { %v390_v2 = vmul.f32 %v389_v59, %v372_v39  ;;  %v366_v3 = vmul.f32 %v365_v60, %v345_v42 }
  0x93   : > { %v394_v7 = vadd.f32 %v390_v2, %v366_v3 }
  0x94   : > { %v376_v40 = vpop.permute.xlu1 %375 }
  0x95   : > { %v432_v44 = vpop.permute.xlu0 %431  ;;  %v391_v13 = vmul.f32 %v389_v59, %v376_v40 }
  0x96   : > { %v447_v26 = vmul.f32 %v1578_v6, %v432_v44 }
  0x99   : > { %v404_v41 = vpop.permute.xlu1 %403 }
  0x9a   : > { %v350_v46 = vpop.permute.xlu0 %349  ;;  %v419_v21 = vmul.f32 %v417_v4, %v404_v41 }
  0x9b   : > { %v367_v8 = vmul.f32 %v365_v60, %v350_v46 }
  0x9d   : > { %v395_v16 = vadd.f32 %v391_v13, %v367_v8 }
  0x9e   : > { %v428_v43 = vpop.permute.xlu1 %427  ;;  %v1555_v48 = vpop.permute.xlu0 %354 }
  0x9f   : > { %v446_v17 = vmul.f32 %v1578_v6, %v428_v43  ;;  %v423_v27 = vadd.f32 %v419_v21, %v395_v16  ;;  %v368_v3 = vmul.f32 %v365_v60, %v1555_v48 }
  0xa1   : > { %v451_v35 = vadd.f32 %v447_v26, %v423_v27 }
  0xa3   : > { %v456_v45 = vpop.permute.xlu1 %455  ;;  %v1561_v52 = vpop.permute.xlu0 %383 }
  0xa4   : > { %v474_v28 = vmul.f32 %v473_v18, %v456_v45  ;;  %v1152_v45 = vld [vmem:[%s1665_s2] ss:$0 sm:$0xff] }
  0xa7   : > { %v460_v47 = vpop.permute.xlu1 %459 }
  0xa8   : > { %v400_v57 = vpop.permute.xlu0 %399  ;;  %v475_v30 = vmul.f32 %v473_v18, %v460_v47 }
  0xa9   : > { %v418_v5 = vmul.f32 %v417_v4, %v400_v57 }
  0xaa   : > { %v479_v39 = vadd.f32 %v475_v30, %v451_v35 }
  0xab   : > { %v422_v14 = vadd.f32 %v418_v5, %v394_v7 }
  0xac   : > { %v1557_v50 = vpop.permute.xlu1 %359  ;;  %v1576_v63 = vpop.permute.xlu0 %407 }
  0xad   : > { %v450_v22 = vadd.f32 %v446_v17, %v422_v14  ;;  %v369_v2 = vmul.f32 %v365_v60, %v1557_v50  ;;  %v420_v15 = vmul.f32 %v417_v4, %v1576_v63 }
  0xaf   : > { %v478_v32 = vadd.f32 %v474_v28, %v450_v22 }
  0xb1   : > { %v1563_v53 = vpop.permute.xlu1 %379  ;;  %v540_v12 = vpop.permute.xlu0 %539 }
  0xb2   : > { %v558_v40 = vmul.f32 %v557_v31, %v540_v12  ;;  %v392_v5 = vmul.f32 %v389_v59, %v1563_v53 }
  0xb4   : > { %v396_v16 = vadd.f32 %v392_v5, %v368_v3 }
  0xb6   : > { %v484_v58 = vpop.permute.xlu1 %483  ;;  %v468_v24 = vpop.permute.xlu0 %467  ;;  %v424_v60 = vadd.f32 %v420_v15, %v396_v16 }
  0xb7   : > { %v502_v29 = vmul.f32 %v501_v19, %v484_v58 }
  0xb9   : > { %v506_v36 = vadd.f32 %v502_v29, %v478_v32 }
  0xba   : > { %v488_v0 = vpop.permute.xlu1 %487 }
  0xbb   : > { %v503_v37 = vmul.f32 %v501_v19, %v488_v0  ;;  %v516_v38 = vpop.permute.xlu0 %515  ;;  %v393_v0 = vmul.f32 %v389_v59, %v1561_v52  ;;  %v477_v52 = vmul.f32 %v473_v18, %v468_v24 }
  0xbc   : > { %v531_v44 = vmul.f32 %v1585_v25, %v516_v38 }
  0xbd   : > { %v507_v43 = vadd.f32 %v503_v37, %v479_v39  ;;  %v397_v12 = vadd.f32 %v393_v0, %v369_v2  ;;  %v1330_v39 = vld [vmem:[%s1668_s5 + $0x28] sm:$0xff]  }
  0xbe   : > { %1208 = vmatpush3.bf16.msra.mxu1 %v1330_v39 }
  0xbf   : > { %v412_v11 = vpop.permute.xlu1 %411  ;;  %v535_v49 = vadd.f32 %v531_v44, %v507_v43  ;;  %v520_v48 = vpop.permute.xlu0 %519 }
  0xc0   : > { %v421_v9 = vmul.f32 %v417_v4, %v412_v11 }
  0xc2   : > { %v425_v17 = vadd.f32 %v421_v9, %v397_v12 }
  0xc4   : > { %v512_v20 = vpop.permute.xlu1 %511  ;;  %v552_v23 = vpop.permute.xlu0 %551 }
  0xc5   : > { %v530_v33 = vmul.f32 %v1585_v25, %v512_v20  ;;  %v561_v29 = vmul.f32 %v557_v31, %v552_v23 }
  0xc7   : > { %v534_v41 = vadd.f32 %v530_v33, %v506_v36 }
  0xc9   : > { %v436_v34 = vpop.permute.xlu1 %435  ;;  %v562_v46 = vadd.f32 %v558_v40, %v534_v41  ;;  %v1333_v40 = vld [vmem:[%s1668_s5 + $0x78] sm:$0xff]  }
  0xca   : > { %v448_v50 = vmul.f32 %v1578_v6, %v436_v34  ;;  %v1334_v41 = vld [vmem:[%s1668_s5 + $0x38] sm:$0xff]  }
  0xcb   : > { %v573_v58 = vadd.f32 %v1152_v45, %v562_v46 }
  0xcc   : > { %v452_v21 = vadd.f32 %v448_v50, %v424_v60  ;;  %v1338_v60 = vld [vmem:[%s1670_s7 + $0x18] sm:$0xff]  }
  0xcd   : > { %v440_v42 = vpop.permute.xlu1 %439  ;;  %v577_v8 = vmax.f32 %v573_v58, 0.0 }
  0xce   : > { %v449_v13 = vmul.f32 %v1578_v6, %v440_v42  ;;  %v532_v6 = vmul.f32 %v1585_v25, %v520_v48  ;;  %v599_v42 = vld [vmem:[%s1667_s4] sm:$0x3] }
  0xcf   : > { %v604_v43 = vrot.slane %v599_v42, %v364_v55  ;;  %v608_v44 = vrot.slane %v599_v42, %v388_v54 }
  0xd0   : > { %v453_v53 = vadd.f32 %v449_v13, %v425_v17 }
  0xd2   : > { %v544_v47 = vpop.permute.xlu1 %543  ;;  %v481_v26 = vadd.f32 %v477_v52, %v453_v53  ;;  %v1335_v52 = vld [vmem:[%s1670_s7] sm:$0xff]   ;;  %v1336_v53 = vld [vmem:[%s1670_s7 + $0x8] sm:$0xff]  }
  0xd3   : > { %v559_v56 = vmul.f32 %v557_v31, %v544_v47  ;;  %1235 = vmatprep.subr.bf16.mxu0 %v1335_v52 }
  0xd5   : > { %v563_v57 = vadd.f32 %v559_v56, %v535_v49 }
  0xd7   : > { %v574_v61 = vadd.f32 %v1152_v45, %v563_v57  ;;  %v464_v62 = vpop.permute.xlu1 %463 }
  0xd8   : > { %v476_v11 = vmul.f32 %v473_v18, %v464_v62 }
  0xd9   : > { %v578_v7 = vmax.f32 %v574_v61, 0.0 }
  0xda   : > { %v480_v27 = vadd.f32 %v476_v11, %v452_v21  ;;  %v1339_v11 = vld [vmem:[%s1670_s7 + $0x20] sm:$0xff]   ;;  %v1341_v21 = vld [vmem:[%s1670_s7 + $0x30] sm:$0xff]  }
  0xdb   : > { %v581_v10 = vpack.c.bf16 %v578_v7, %v577_v8 }
  0xdc   : > { %v492_v14 = vpop.permute.xlu1 %491 }
  0xdd   : > { %724 = vmatmul.mubr.bf16.vlgmr.msra.gmra.mrb[0].mxu0 %v581_v10  ;;  %v504_v22 = vmul.f32 %v501_v19, %v492_v14 }
  0xde   : > { %733 = vmatprep.mubr.bf16.mxu0 %v1360_v1  ;;  %1236 = vmatpush3.bf16.msra.mxu0 %v1335_v52 }
  0xdf   : > { %v508_v1 = vadd.f32 %v504_v22, %v480_v27  ;;  %1237 = vmatprep.subr.bf16.mxu0 %v1336_v53  ;;  %v1342_v22 = vld [vmem:[%s1670_s7 + $0x38] sm:$0xff]  }
  0xe0   : > { %v496_v59 = vpop.permute.xlu1 %495 }
  0xe1   : > { %v505_v20 = vmul.f32 %v501_v19, %v496_v59  ;;  %v536_v33 = vadd.f32 %v532_v6, %v508_v1  ;;  %v1337_v59 = vld [vmem:[%s1670_s7 + $0x10] sm:$0xff]  }
  0xe2   : > { %1238 = vmatpush3.bf16.msra.mxu0 %v1336_v53 }
  0xe3   : > { %v509_v4 = vadd.f32 %v505_v20, %v481_v26  ;;  %1239 = vmatprep.subr.bf16.mxu0 %v1337_v59  ;;  %v1340_v20 = vld [vmem:[%s1670_s7 + $0x28] sm:$0xff]   ;;  %v1169_v26 = vld [vmem:[%s1669_s6] ss:$0 sm:$0xff] }
  0xe5   : > { %v524_v63 = vpop.permute.xlu1 %523 }
  0xe6   : > { %v533_v28 = vmul.f32 %v1585_v25, %v524_v63  ;;  %v1331_v25 = vld [vmem:[%s1668_s5 + $0x70] sm:$0xff]   ;;  %1240 = vmatpush3.bf16.msra.mxu0 %v1337_v59 }
  0xe7   : > { %1209 = vmatprep.subr.bf16.mxu1 %v1331_v25  ;;  %1241 = vmatprep.subr.bf16.mxu0 %v1338_v60 }
  0xe8   : > { %v537_v30 = vadd.f32 %v533_v28, %v509_v4 }
  0xea   : > { %v565_v24 = vadd.f32 %v561_v29, %v537_v30  ;;  %v548_v32 = vpop.permute.xlu1 %547  ;;  %1242 = vmatpush3.bf16.msra.mxu0 %v1338_v60 }
  0xeb   : > { %v560_v34 = vmul.f32 %v557_v31, %v548_v32  ;;  %v1332_v31 = vld [vmem:[%s1668_s5 + $0x30] sm:$0xff]   ;;  %1243 = vmatprep.subr.bf16.mxu0 %v1339_v11 }
  0xec   : > { %v576_v18 = vadd.f32 %v1152_v45, %v565_v24  ;;  %1210 = vmatpush3.bf16.msra.mxu1 %v1332_v31 }
  0xed   : > { %v564_v35 = vadd.f32 %v560_v34, %v536_v33  ;;  %1211 = vmatprep.subr.bf16.mxu1 %v1333_v40  ;;  %v1186_v40 = vld [vmem:[%s1671_s8] ss:$0 sm:$0xff] }
  0xee   : > { %v580_v19 = vmax.f32 %v576_v18, 0.0  ;;  %1244 = vmatpush3.bf16.msra.mxu0 %v1339_v11 }
  0xef   : > { %v575_v36 = vadd.f32 %v1152_v45, %v564_v35  ;;  %1245 = vmatprep.subr.bf16.mxu0 %v1340_v20 }
  0xf0   : > { %1212 = vmatpush3.bf16.msra.mxu1 %v1334_v41 }
  0xf1   : > { %v579_v37 = vmax.f32 %v575_v36, 0.0 }
  0xf2   : > { %1246 = vmatpush3.bf16.msra.mxu0 %v1340_v20 }
  0xf3   : > { %v582_v38 = vpack.c.bf16 %v580_v19, %v579_v37  ;;  %1247 = vmatprep.subr.bf16.mxu0 %v1341_v21 }
  0xf5   : > { %734 = vmatmul.mubr.bf16.gmra.mrb[4].mxu0 %v582_v38 }
  0xf6   : > { %1248 = vmatpush3.bf16.msra.mxu0 %v1341_v21 }
  0xf7   : > { %1249 = vmatprep.subr.bf16.mxu0 %v1342_v22 }
  0xfa   : > { %1250 = vmatpush3.bf16.msra.mxu0 %v1342_v22 }
 0x1b0   : > { %v725_v46 = vpop.f32.mrb[0].mxu0 }
 0x1b1   : > { %v726_v45 = vadd.f32 %v725_v46, %v604_v43  ;;  %v727_v47 = vpop.f32.mrb[1].mxu0 }
 0x1b2   : > { %v728_v49 = vadd.f32 %v727_v47, %v608_v44  ;;  %v729_v56 = vpop.f32.mrb[2].mxu0 }
 0x1b3   : > { %v730_v57 = vadd.f32 %v729_v56, %v604_v43  ;;  %v731_v58 = vpop.f32.mrb[3].mxu0  ;;  %v744_v62 = vmax.f32 %v726_v45, 0.0 }
 0x1b4   : > { %v732_v61 = vadd.f32 %v731_v58, %v608_v44  ;;  %v745_v2 = vmax.f32 %v728_v49, 0.0 }
 0x1b5   : > { %v746_v0 = vmax.f32 %v730_v57, 0.0 }
 0x1b6   : > { %v747_v3 = vmax.f32 %v732_v61, 0.0 }
 0x1b7   : > { %v752_v5 = vpack.c.bf16 %v746_v0, %v744_v62 }
 0x1b8   : > { %v753_v7 = vpack.c.bf16 %v747_v3, %v745_v2 }
 0x1ba   : > { %923 = vmatprep.mubr.bf16.mxu1 %v753_v7 }
 0x1bb   : > { %924 = vmatmul.mubr.bf16.vlgmr.msra.gmra.mrb[0].mxu1 %v752_v5 }
 0x1c8   : > { %v735_v55 = vpop.f32.mrb[4].mxu0 }
 0x1c9   : > { %v736_v8 = vadd.f32 %v735_v55, %v604_v43  ;;  %v737_v51 = vpop.f32.mrb[5].mxu0 }
 0x1ca   : > { %v738_v54 = vadd.f32 %v737_v51, %v608_v44  ;;  %v739_v9 = vpop.f32.mrb[6].mxu0 }
 0x1cb   : > { %v740_v10 = vadd.f32 %v739_v9, %v604_v43  ;;  %v741_v12 = vpop.f32.mrb[7].mxu0  ;;  %v748_v14 = vmax.f32 %v736_v8, 0.0 }
 0x1cc   : > { %v742_v13 = vadd.f32 %v741_v12, %v608_v44  ;;  %v749_v16 = vmax.f32 %v738_v54, 0.0 }
 0x1cd   : > { %v750_v15 = vmax.f32 %v740_v10, 0.0 }
 0x1ce   : > { %v751_v17 = vmax.f32 %v742_v13, 0.0 }
 0x1cf   : > { %v754_v50 = vpack.c.bf16 %v750_v15, %v748_v14 }
 0x1d0   : > { %v755_v48 = vpack.c.bf16 %v751_v17, %v749_v16 }
 0x1d2   : > { %931 = vmatprep.mubr.bf16.mxu1 %v755_v48 }
 0x1d3   : > { %932 = vmatmul.mubr.bf16.gmra.mrb[4].mxu1 %v754_v50 }
 0x28e   : > { %v1213_v23 = vpop.f32.mrb[0].mxu1 }
 0x28f   : > { %v1214_v27 = vpop.f32.mrb[1].mxu1 }
 0x290   : > { %v1215_v63 = vadd.f32 %v1214_v27, %v1213_v23  ;;  %v1216_v4 = vpop.f32.mrb[2].mxu1 }
 0x291   : > { %v1217_v28 = vpop.f32.mrb[3].mxu1 }
 0x292   : > { %v926_v29 = vadd.f32 %v1215_v63, %v1169_v26  ;;  %v1218_v1 = vadd.f32 %v1217_v28, %v1216_v4 }
 0x294   : > { %v929_v6 = vadd.f32 %v1218_v1, %v1169_v26  ;;  %v940_v30 = vmax.f32 %v926_v29, 0.0 }
 0x296   : > { %v941_v24 = vmax.f32 %v929_v6, 0.0 }
 0x298   : > { %v944_v32 = vpack.c.bf16 %v941_v24, %v940_v30 }
 0x29a   : > { %1251 = vmatprep.mubr.bf16.mxu0 %v944_v32 }
 0x2a6   : > { %v1219_v33 = vpop.f32.mrb[4].mxu1 }
 0x2a7   : > { %v1220_v34 = vpop.f32.mrb[5].mxu1 }
 0x2a8   : > { %v1221_v18 = vadd.f32 %v1220_v34, %v1219_v33  ;;  %v1222_v35 = vpop.f32.mrb[6].mxu1 }
 0x2a9   : > { %v1223_v36 = vpop.f32.mrb[7].mxu1 }
 0x2aa   : > { %v934_v19 = vadd.f32 %v1221_v18, %v1169_v26  ;;  %v1224_v37 = vadd.f32 %v1223_v36, %v1222_v35 }
 0x2ac   : > { %v937_v38 = vadd.f32 %v1224_v37, %v1169_v26  ;;  %v942_v39 = vmax.f32 %v934_v19, 0.0 }
 0x2ae   : > { %v943_v25 = vmax.f32 %v937_v38, 0.0 }
 0x2b0   : > { %v945_v31 = vpack.c.bf16 %v943_v25, %v942_v39 }
 0x2b2   : > { %1252 = vmatmul.mubr.bf16.vlgmr.msra.gmra.mrb[8].mxu0 %v945_v31 }
 0x385   : > { %v1253_v41 = vpop.f32.mrb[8].mxu0 }
 0x386   : > { %v1060_v42 = vadd.f32 %v1253_v41, %v1186_v40  ;;  %v1051_v43 = vpop.f32.mrb[9].mxu0 }
 0x387   : > { %v1052_v44 = vadd.f32 %v1186_v40, %v1051_v43  ;;  %v1254_v46 = vpop.f32.mrb[10].mxu0 }
 0x388   : > { %v1068_v45 = vmul.f32 0.5, %v1060_v42  ;;  %v1063_v47 = vadd.f32 %v1254_v46, %v1186_v40  ;;  %v1054_v49 = vpop.f32.mrb[11].mxu0 }
 0x389   : > { %v1066_v56 = vmul.f32 0.5, %v1052_v44  ;;  %v1055_v57 = vadd.f32 %v1186_v40, %v1054_v49 }
 0x38a   : > { %1343 = vtanh.f32 %v1068_v45  ;;  %v1069_v58 = vmul.f32 0.5, %v1063_v47 }
 0x38b   : > { %1345 = vtanh.f32 %v1066_v56  ;;  %v1067_v61 = vmul.f32 0.5, %v1055_v57 }
 0x38c   : > { %1347 = vtanh.f32 %v1069_v58 }
 0x38d   : > { %1349 = vtanh.f32 %v1067_v61 }
 0x394   : > { %v1344_v62 = vpop.eup %1343 }
 0x395   : > { %v1346_v0 = vpop.eup %1345  ;;  %v1076_v7 = vmul.f32 50.0, %v1344_v62 }
 0x396   : > { %v1348_v2 = vpop.eup %1347  ;;  %v1074_v3 = vmul.f32 50.0, %v1346_v0 }
 0x397   : > { %v1350_v5 = vpop.eup %1349  ;;  %v1077_v8 = vmul.f32 50.0, %v1348_v2  ;;  %v1080_v9 = vadd.f32 50.0, %v1076_v7 }
 0x398   : > { %v1078_v55 = vadd.f32 50.0, %v1074_v3  ;;  %v1075_v51 = vmul.f32 50.0, %v1350_v5 }
 0x399   : > { %v1081_v10 = vadd.f32 50.0, %v1077_v8  ;;  %1085 = vst.msk [vmem:[%s334_s18 + $0x10] sm:$0xff] %vm1082_vm0, %v1080_v9 }
 0x39a   : > { %1083 = vst.msk [vmem:[%s334_s18] sm:$0xff] %vm1082_vm0, %v1078_v55  ;;  %v1079_v54 = vadd.f32 50.0, %v1075_v51 }
 0x39b   : > { %1086 = vst.msk [vmem:[%s334_s18 + $0x18] sm:$0xff] %vm1082_vm0, %v1081_v10 }
 0x39c   : > { %1084 = vst.msk [vmem:[%s334_s18 + $0x8] sm:$0xff] %vm1082_vm0, %v1079_v54 }
 0x39d PF: > { %s19_s30 = sadd.s32 1, %s1357_s30  }
 0x39e   : > { %p16_p4 = scmp.ge.s32.totalorder %s19_s30, 4  }
 0x3a0   :  { %18 = sbr.rel (!%p16_p4) target bundleno = 1 (0x1), region = 86 }

</bundles_post_ra>
